<compile_context>
chip_gen: v6e
topology: v6e:2x2x1
jax: 0.10.0
libtpu: 0.0.40
codegen_flags: <defaults>
</compile_context>

<pallas_src>
import numpy as np
import jax
import jax.numpy as jnp
from jax.experimental import pallas as pl
from jax.experimental.pallas import tpu as pltpu

FEATS = [32, 32, 64, 128, 256, 32]
LRELU = 0.1
EPS = 1e-5


# ----------------------------------------------------------------------------
# Host-side constant builders (numpy): DFT Kronecker matrices and the 0/1
# routing matrices that implement conv taps / max-pool / deconv scatter.
# ----------------------------------------------------------------------------

def centered_dft_mat(n, inverse):
    eye = np.eye(n)
    if inverse:
        m = np.fft.fftshift(np.fft.ifft(np.fft.ifftshift(eye, axes=0), axis=0, norm="ortho"), axes=0)
    else:
        m = np.fft.fftshift(np.fft.fft(np.fft.ifftshift(eye, axes=0), axis=0, norm="ortho"), axes=0)
    return m


def conv_shift_mats(H, W):
    """T[t]: (HW,HW) 0/1 matrix s.t. (T[t] @ x_flat) is x shifted by tap t with zero padding."""
    HW = H * W
    ys, xs = np.meshgrid(np.arange(H), np.arange(W), indexing="ij")
    rows_all = (ys * W + xs).reshape(-1)
    T = np.zeros((9, HW, HW), np.float32)
    t = 0
    for dy in (-1, 0, 1):
        for dx in (-1, 0, 1):
            yy, xx = ys + dy, xs + dx
            valid = ((yy >= 0) & (yy < H) & (xx >= 0) & (xx < W)).reshape(-1)
            src = (np.clip(yy, 0, H - 1) * W + np.clip(xx, 0, W - 1)).reshape(-1)
            T[t, rows_all[valid], src[valid]] = 1.0
            t += 1
    return T


def pool_gather_mats(H, W):
    """G[k]: (HW/4, HW) gathers the k-th element of each 2x2 window (max of the 4 = max-pool)."""
    Ho, Wo = H // 2, W // 2
    G = np.zeros((4, Ho * Wo, H * W), np.float32)
    for k, (dy, dx) in enumerate(((0, 0), (0, 1), (1, 0), (1, 1))):
        for y in range(Ho):
            for x in range(Wo):
                G[k, y * Wo + x, (2 * y + dy) * W + (2 * x + dx)] = 1.0
    return G


def deconv_scatter_mats(h, w):
    """S[k]: (4hw, hw) places tap k of a 2x2-stride-2 transposed conv at its output pixel."""
    Wo = 2 * w
    S = np.zeros((4, 4 * h * w, h * w), np.float32)
    for k, (dy, dx) in enumerate(((0, 0), (0, 1), (1, 0), (1, 1))):
        for y in range(h):
            for x in range(w):
                S[k, (2 * y + dy) * Wo + (2 * x + dx), y * w + x] = 1.0
    return S


def build_time_matrix(B, times):
    """pred_log = final_out @ M + logx  (columns ordered b*3+e, final_out columns b*2+{0,1})."""
    m = np.zeros((B * 2, B * 3), np.float32)
    for b in range(B):
        for e in range(3):
            m[b * 2 + 0, b * 3 + e] = 1.0
            m[b * 2 + 1, b * 3 + e] = float(times[e])
    return jnp.asarray(m)


def build_consts(B, H, W):
    assert H == 16 and W == 16, "demo constants assume 4 poolings down to 1x1 (H=W=16)"
    d2i = np.kron(centered_dft_mat(H, True), centered_dft_mat(W, True))    # img_vec = D2i @ k_vec
    d2f = np.kron(centered_dft_mat(H, False), centered_dft_mat(W, False))  # k_vec  = D2f @ img_vec
    consts = {
        "D2iT_r": jnp.asarray(d2i.T.real, jnp.float32),
        "D2iT_i": jnp.asarray(d2i.T.imag, jnp.float32),
        "F2r": jnp.asarray(d2f.real, jnp.float32),
        "F2i": jnp.asarray(d2f.imag, jnp.float32),
        "Mtime": build_time_matrix(B, np.array([0.0, 35.0, 55.0], np.float32)),
    }
    hs = [H >> i for i in range(5)]
    ws = [W >> i for i in range(5)]
    consts["T"] = [jnp.asarray(conv_shift_mats(hs[i], ws[i])) for i in range(4)]     # levels 0..3
    consts["G"] = [jnp.asarray(pool_gather_mats(hs[i], ws[i])) for i in range(4)]    # pool i -> i+1
    consts["SU"] = [jnp.asarray(deconv_scatter_mats(hs[i + 1], ws[i + 1])) for i in range(4)]  # up -> level i
    return consts


# ----------------------------------------------------------------------------
# Synthetic UNet parameters (deterministic).
# ----------------------------------------------------------------------------

def init_unet_params(key):
    f = FEATS
    ks = iter(jax.random.split(key, 32))

    def conv(cin, cout):
        scale = (2.0 / (9 * cin)) ** 0.5
        return {"w": jax.random.normal(next(ks), (9, cin, cout), jnp.float32) * scale,
                "g": jnp.ones((cout,), jnp.float32), "b": jnp.zeros((cout,), jnp.float32)}

    def conv2(c_skip, c_up, cout):
        scale = (2.0 / (9 * (c_skip + c_up))) ** 0.5
        return {"wa": jax.random.normal(next(ks), (9, c_skip, cout), jnp.float32) * scale,
                "wb": jax.random.normal(next(ks), (9, c_up, cout), jnp.float32) * scale,
                "g": jnp.ones((cout,), jnp.float32), "b": jnp.zeros((cout,), jnp.float32)}

    def deconv(cin, cout):
        scale = (2.0 / (4 * cin)) ** 0.5
        return {"w": jax.random.normal(next(ks), (4, cin, cout), jnp.float32) * scale,
                "b": jnp.zeros((cout,), jnp.float32)}

    p = {}
    p["enc0_c1"] = conv(6, f[0]);      p["enc0_c2"] = conv(f[0], f[0])
    p["down1_c1"] = conv(f[0], f[1]);  p["down1_c2"] = conv(f[1], f[1])
    p["down2_c1"] = conv(f[1], f[2]);  p["down2_c2"] = conv(f[2], f[2])
    p["down3_c1"] = conv(f[2], f[3]);  p["down3_c2"] = conv(f[3], f[3])
    p["down4_c1"] = conv(f[3], f[4]);  p["down4_c2"] = conv(f[4], f[4])
    p["up4_dc"] = deconv(f[4], f[3]);  p["up4_c1"] = conv2(f[3], f[3], f[3]); p["up4_c2"] = conv(f[3], f[3])
    p["up3_dc"] = deconv(f[3], f[2]);  p["up3_c1"] = conv2(f[2], f[2], f[2]); p["up3_c2"] = conv(f[2], f[2])
    p["up2_dc"] = deconv(f[2], f[1]);  p["up2_c1"] = conv2(f[1], f[1], f[1]); p["up2_c2"] = conv(f[1], f[1])
    p["up1_dc"] = deconv(f[1], f[0]);  p["up1_c1"] = conv2(f[0], f[0], f[5]); p["up1_c2"] = conv(f[5], f[5])
    # small final-conv init so exp() in the parametric head stays well-behaved
    p["final"] = {"w": jax.random.normal(next(ks), (f[5], 2), jnp.float32) * 0.01,
                  "b": jnp.zeros((2,), jnp.float32)}
    return p


def block_diag_taps(w, B):
    """(T, Ci, Co) -> (T, B*Ci, B*Co) block-diagonal over batch."""
    T, ci, co = w.shape
    eye = jnp.eye(B, dtype=w.dtype)
    return jnp.einsum("ab,tio->taibo", eye, w).reshape(T, B * ci, B * co)


def block_diag_2d(w, B):
    ci, co = w.shape
    eye = jnp.eye(B, dtype=w.dtype)
    return jnp.einsum("ab,io->aibo", eye, w).reshape(B * ci, B * co)


def build_fused_param_inputs(params, consts, B):
    """Static (data-independent) inputs of the fused UNet+predict+FFT kernel, in a fixed order."""
    named = {}
    for i in range(4):
        named[f"T{i}"] = consts["T"][i]
        named[f"G{i}"] = consts["G"][i]
        named[f"SU{i}"] = consts["SU"][i]

    def add_conv(nm, center_only=False):
        p = params[nm]
        w = p["w"][4:5] if center_only else p["w"]   # 1x1 spatial level: only the center tap acts
        named[nm + ".w"] = block_diag_taps(w, B).astype(jnp.bfloat16)
        named[nm + ".g"] = jnp.tile(p["g"], B)[None, :]
        named[nm + ".b"] = jnp.tile(p["b"], B)[None, :]

    def add_conv2(nm):
        p = params[nm]
        named[nm + ".wa"] = block_diag_taps(p["wa"], B).astype(jnp.bfloat16)
        named[nm + ".wb"] = block_diag_taps(p["wb"], B).astype(jnp.bfloat16)
        named[nm + ".g"] = jnp.tile(p["g"], B)[None, :]
        named[nm + ".b"] = jnp.tile(p["b"], B)[None, :]

    def add_deconv(nm):
        p = params[nm]
        named[nm + ".w"] = block_diag_taps(p["w"], B).astype(jnp.bfloat16)
        named[nm + ".b"] = jnp.tile(p["b"], B)[None, :]

    for nm in ("enc0_c1", "enc0_c2", "down1_c1", "down1_c2",
               "down2_c1", "down2_c2", "down3_c1", "down3_c2"):
        add_conv(nm)
    add_conv("down4_c1", center_only=True)
    add_conv("down4_c2", center_only=True)
    for lvl in ("up4", "up3", "up2", "up1"):
        add_deconv(lvl + "_dc")
        add_conv2(lvl + "_c1")
        add_conv(lvl + "_c2")

    named["final.w"] = block_diag_2d(params["final"]["w"], B)          # kept f32 (feeds exp head)
    named["final.b"] = jnp.tile(params["final"]["b"], B)[None, :]
    named["Mtime"] = consts["Mtime"]
    named["F2r"] = consts["F2r"]
    named["F2i"] = consts["F2i"]
    return named


# ----------------------------------------------------------------------------
# Kernel 1: batched centered inverse DFT + polar features (one grid step).
# ----------------------------------------------------------------------------

def idft_polar_kernel(kr_ref, ki_ref, dr_ref, di_ref,
                      xr_ref, xi_ref, ab_ref, lg_ref, pr_ref, pi_ref):
    kr = kr_ref[...]
    ki = ki_ref[...]
    dr = dr_ref[...]
    di = di_ref[...]
    xr = (jnp.dot(kr, dr, preferred_element_type=jnp.float32)
          - jnp.dot(ki, di, preferred_element_type=jnp.float32))
    xi = (jnp.dot(kr, di, preferred_element_type=jnp.float32)
          + jnp.dot(ki, dr, preferred_element_type=jnp.float32))
    mag = jnp.sqrt(xr * xr + xi * xi)
    xr_ref[...] = xr
    xi_ref[...] = xi
    ab_ref[...] = mag
    lg_ref[...] = jnp.log(mag + 1.0)
    # exp(1j*angle(k)) = (kr + i ki)/|k|; angle(0)=0 => phase = 1 + 0j
    kmag = jnp.sqrt(kr * kr + ki * ki)
    safe = jnp.where(kmag > 0.0, kmag, 1.0)
    rin = pl.reciprocal(safe, approx=True)
    pr_ref[...] = jnp.where(kmag > 0.0, kr * rin, 1.0)
    pi_ref[...] = jnp.where(kmag > 0.0, ki * rin, 0.0)


def kspace_to_image_features(kr, ki, d2iT_r, d2iT_i):
    N, HW = kr.shape
    vm = pl.BlockSpec(memory_space=pltpu.MemorySpace.VMEM)
    outs = tuple(jax.ShapeDtypeStruct((N, HW), jnp.float32) for _ in range(6))
    return pl.pallas_call(
        idft_polar_kernel,
        out_shape=outs,
        in_specs=[vm, vm, vm, vm],
        out_specs=tuple(vm for _ in range(6)),
    )(kr, ki, d2iT_r, d2iT_i)


# ----------------------------------------------------------------------------
# Kernel 2: fused UNet + parametric T2 head + centered forward DFT.
# Activations are (H*W, B*C): spatial on sublanes, (batch, channel) on lanes.
# ----------------------------------------------------------------------------

def make_fused_kernel(names):
    n_in = len(names)
    idx = {nm: i for i, nm in enumerate(names)}

    def kernel(*refs):
        kr_ref, ki_ref = refs[n_in], refs[n_in + 1]

        def get(nm):
            return refs[idx[nm]][...]

        def in_lrelu(acc, g, b):
            # InstanceNorm2d over spatial (rows) per (batch, channel) column + LeakyReLU(0.1).
            mean = jnp.mean(acc, axis=0, keepdims=True)
            cen = acc - mean
            var = jnp.mean(cen * cen, axis=0, keepdims=True)
            y = cen * jax.lax.rsqrt(var + EPS)
            y = y * g + b
            return jnp.where(y >= 0.0, y, LRELU * y)

        def conv_block(x, nm, tmat):
            # conv bias omitted: it is exactly cancelled by the InstanceNorm mean subtraction.
            w = get(nm + ".w")                       # (ntaps, B*Ci, B*Co) bf16 block-diag
            xb = x.astype(jnp.bfloat16)
            if tmat is None:                         # 1x1 spatial: only the center tap
                acc = jnp.dot(xb, w[0], preferred_element_type=jnp.float32)
            else:
                acc = jnp.zeros((x.shape[0], w.shape[2]), jnp.float32)
                for t in range(9):
                    y = jnp.dot(xb, w[t], preferred_element_type=jnp.float32)
                    acc = acc + jnp.dot(tmat[t], y, preferred_element_type=jnp.float32)
            return in_lrelu(acc, get(nm + ".g"), get(nm + ".b"))

        def conv_block2(xs, xu, nm, tmat):
            # first conv of an Up block: conv(concat([skip, up])) done as a channel-split sum.
            wa = get(nm + ".wa")
            wb = get(nm + ".wb")
            sa = xs.astype(jnp.bfloat16)
            sb = xu.astype(jnp.bfloat16)
            acc = jnp.zeros((xs.shape[0], wa.shape[2]), jnp.float32)
            for t in range(9):
                y = (jnp.dot(sa, wa[t], preferred_element_type=jnp.float32)
                     + jnp.dot(sb, wb[t], preferred_element_type=jnp.float32))
                acc = acc + jnp.dot(tmat[t], y, preferred_element_type=jnp.float32)
            return in_lrelu(acc, get(nm + ".g"), get(nm + ".b"))

        def maxpool(x, gmat):
            p = jnp.dot(gmat[0], x, preferred_element_type=jnp.float32)
            for k in range(1, 4):
                p = jnp.maximum(p, jnp.dot(gmat[k], x, preferred_element_type=jnp.float32))
            return p

        def deconv(x, nm, smat):
            w = get(nm + ".w")                       # (4, B*Ci, B*Co) bf16 block-diag
            xb = x.astype(jnp.bfloat16)
            out = None
            for k in range(4):
                y = jnp.dot(xb, w[k], preferred_element_type=jnp.float32)   # (hw_in, B*Co)
                if x.shape[0] == 1:                  # 1x1 source: scatter = outer/broadcast
                    c = smat[k] * y
                else:
                    c = jnp.dot(smat[k], y, preferred_element_type=jnp.float32)
                out = c if out is None else out + c
            return out + get(nm + ".b")

        t0, t1, t2, t3 = get("T0"), get("T1"), get("T2"), get("T3")
        g0, g1, g2, g3 = get("G0"), get("G1"), get("G2"), get("G3")
        su0, su1, su2, su3 = get("SU0"), get("SU1"), get("SU2"), get("SU3")

        # ---- encoder ----
        x = get("feat")                                                     # (256, B*6)
        x0 = conv_block(conv_block(x, "enc0_c1", t0), "enc0_c2", t0)        # (256, B*32)
        d1 = conv_block(conv_block(maxpool(x0, g0), "down1_c1", t1), "down1_c2", t1)   # (64, B*32)
        d2 = conv_block(conv_block(maxpool(d1, g1), "down2_c1", t2), "down2_c2", t2)   # (16, B*64)
        d3 = conv_block(conv_block(maxpool(d2, g2), "down3_c1", t3), "down3_c2", t3)   # (4,  B*128)
        d4 = conv_block(conv_block(maxpool(d3, g3), "down4_c1", None), "down4_c2", None)  # (1, B*256)

        # ---- decoder (skip first, upsampled second, as in MONAI UpCat) ----
        u4 = conv_block(conv_block2(d3, deconv(d4, "up4_dc", su3), "up4_c1", t3), "up4_c2", t3)
        u3 = conv_block(conv_block2(d2, deconv(u4, "up3_dc", su2), "up3_c1", t2), "up3_c2", t2)
        u2 = conv_block(conv_block2(d1, deconv(u3, "up2_dc", su1), "up2_c1", t1), "up2_c2", t1)
        u1 = conv_block(conv_block2(x0, deconv(u2, "up1_dc", su0), "up1_c1", t0), "up1_c2", t0)

        # ---- final 1x1 conv (f32) ----
        out = jnp.dot(u1, get("final.w"), preferred_element_type=jnp.float32) + get("final.b")

        # ---- parametric T2 head + k-space phase + centered forward DFT ----
        pred_log = jnp.dot(out, get("Mtime"), preferred_element_type=jnp.float32) + get("logx")
        pred = jnp.exp(pred_log) - 1.0                                      # (256, B*3)
        cr = pred * get("phr")
        ci = pred * get("phi")
        fr = get("F2r")
        fi = get("F2i")
        kr_ref[...] = (jnp.dot(fr, cr, preferred_element_type=jnp.float32)
                       - jnp.dot(fi, ci, preferred_element_type=jnp.float32))
        ki_ref[...] = (jnp.dot(fr, ci, preferred_element_type=jnp.float32)
                       + jnp.dot(fi, cr, preferred_element_type=jnp.float32))

    return kernel


# ----------------------------------------------------------------------------
# Full forward.
# ----------------------------------------------------------------------------

def parametric_t2_predict(static_named, consts, x_kspace, x_kspace_mask=None,
                          y_kspace=None, name=None):
    del x_kspace_mask, name
    B, C, one, H, W = x_kspace.shape
    assert C == 3 and one == 1
    HW = H * W

    kr = jnp.real(x_kspace).astype(jnp.float32).reshape(B * 3, HW)
    ki = jnp.imag(x_kspace).astype(jnp.float32).reshape(B * 3, HW)

    # kspace -> image (batched centered iDFT), |img|, log1p(|img|), phase of original k-space.
    xr, xi, mag, lg, pr, pi = kspace_to_image_features(kr, ki, consts["D2iT_r"], consts["D2iT_i"])

    # TODO(synk): arctan2 kept in (tiny) JAX glue; fold into the fused kernel once Mosaic atan2
    # lowering is confirmed on the target jaxlib.
    ang = jnp.arctan2(xi, xr)

    # UNet input: (HW, B*6); columns per batch are [abs_e0..abs_e2, ang_e0..ang_e2] (torch cat order).
    feat = jnp.concatenate([mag.reshape(B, 3, HW), ang.reshape(B, 3, HW)], axis=1)
    feat = feat.reshape(B * 6, HW).T

    named = dict(static_named)
    named["feat"] = feat
    named["logx"] = lg.T        # (HW, B*3)
    named["phr"] = pr.T
    named["phi"] = pi.T

    names = tuple(named.keys())
    kernel = make_fused_kernel(names)
    vm = pl.BlockSpec(memory_space=pltpu.MemorySpace.VMEM)
    kr2, ki2 = pl.pallas_call(
        kernel,
        out_shape=(jax.ShapeDtypeStruct((HW, B * 3), jnp.float32),
                   jax.ShapeDtypeStruct((HW, B * 3), jnp.float32)),
        in_specs=[vm] * len(names),
        out_specs=(vm, vm),
        compiler_params=pltpu.CompilerParams(vmem_limit_bytes=48 * 1024 * 1024),
    )(*[named[k] for k in names])

    predicted_kspaces = (kr2 + 1j * ki2).T.reshape(B, 3, 1, H, W).astype(jnp.complex64)

    # TODO(synk): loss branch (y_kspace given) needs compute_t2_mapping / torch.quantile masking;
    # not exercised in the inference path implemented here.
    return {"loss": None, "output": predicted_kspaces}


# ----------------------------------------------------------------------------
# Main
# ----------------------------------------------------------------------------

if __name__ == "__main__":
    key = jax.random.PRNGKey(0)
    kparams, kdata = jax.random.split(key)

    B, H, W = 2, 16, 16
    params = init_unet_params(kparams)
    consts = build_consts(B, H, W)
    static_named = build_fused_param_inputs(params, consts, B)

    k1, k2 = jax.random.split(kdata)
    x_kspace = (jax.random.normal(k1, (B, 3, 1, H, W), jnp.float32)
                + 1j * jax.random.normal(k2, (B, 3, 1, H, W), jnp.float32)).astype(jnp.complex64)
    x_kspace_mask = jnp.ones((B, 3, 1, H, W), jnp.float32)

    result = parametric_t2_predict(static_named, consts, x_kspace, x_kspace_mask)
    out = jax.block_until_ready(result["output"])
    assert out.shape == (B, 3, 1, H, W)
    assert out.dtype == jnp.complex64
    assert bool(jnp.all(jnp.isfinite(out.real) & jnp.isfinite(out.imag)))
    print("KERNEL_OK")
</pallas_src>

<mosaic_0001>
module attributes {stable_mosaic.version = 11 : i64} {
  func.func @idft_polar_kernel(%arg0: memref<6x256xf32, #tpu.memory_space<vmem>>, %arg1: memref<6x256xf32, #tpu.memory_space<vmem>>, %arg2: memref<256x256xf32, #tpu.memory_space<vmem>>, %arg3: memref<256x256xf32, #tpu.memory_space<vmem>>, %arg4: memref<6x256xf32, #tpu.memory_space<vmem>>, %arg5: memref<6x256xf32, #tpu.memory_space<vmem>>, %arg6: memref<6x256xf32, #tpu.memory_space<vmem>>, %arg7: memref<6x256xf32, #tpu.memory_space<vmem>>, %arg8: memref<6x256xf32, #tpu.memory_space<vmem>>, %arg9: memref<6x256xf32, #tpu.memory_space<vmem>>) attributes {dimension_semantics = [], scalar_prefetch = 0 : i64, scratch_operands = 0 : i64, tpu.core_type = #tpu.core_type<tc>} {
    %c0 = arith.constant 0 : index
    %c0_0 = arith.constant 0 : index
    %0 = vector.load %arg0[%c0, %c0_0] : memref<6x256xf32, #tpu.memory_space<vmem>>, vector<6x256xf32>
    %c0_1 = arith.constant 0 : index
    %c0_2 = arith.constant 0 : index
    %1 = vector.load %arg1[%c0_1, %c0_2] : memref<6x256xf32, #tpu.memory_space<vmem>>, vector<6x256xf32>
    %c0_3 = arith.constant 0 : index
    %c0_4 = arith.constant 0 : index
    %2 = vector.load %arg2[%c0_3, %c0_4] : memref<256x256xf32, #tpu.memory_space<vmem>>, vector<256x256xf32>
    %c0_5 = arith.constant 0 : index
    %c0_6 = arith.constant 0 : index
    %3 = vector.load %arg3[%c0_5, %c0_6] : memref<256x256xf32, #tpu.memory_space<vmem>>, vector<256x256xf32>
    %cst = arith.constant dense<0.000000e+00> : vector<6x256xf32>
    %4 = tpu.matmul %0, %2, %cst {dimension_numbers = #tpu.dot_dimension_numbers<[1], [0], [0], [1], [0, 0, 1, 1], [], []>} : vector<6x256xf32>, vector<256x256xf32>, vector<6x256xf32> -> vector<6x256xf32>
    %cst_7 = arith.constant dense<0.000000e+00> : vector<6x256xf32>
    %5 = tpu.matmul %1, %3, %cst_7 {dimension_numbers = #tpu.dot_dimension_numbers<[1], [0], [0], [1], [0, 0, 1, 1], [], []>} : vector<6x256xf32>, vector<256x256xf32>, vector<6x256xf32> -> vector<6x256xf32>
    %6 = arith.subf %4, %5 : vector<6x256xf32>
    %cst_8 = arith.constant dense<0.000000e+00> : vector<6x256xf32>
    %7 = tpu.matmul %0, %3, %cst_8 {dimension_numbers = #tpu.dot_dimension_numbers<[1], [0], [0], [1], [0, 0, 1, 1], [], []>} : vector<6x256xf32>, vector<256x256xf32>, vector<6x256xf32> -> vector<6x256xf32>
    %cst_9 = arith.constant dense<0.000000e+00> : vector<6x256xf32>
    %8 = tpu.matmul %1, %2, %cst_9 {dimension_numbers = #tpu.dot_dimension_numbers<[1], [0], [0], [1], [0, 0, 1, 1], [], []>} : vector<6x256xf32>, vector<256x256xf32>, vector<6x256xf32> -> vector<6x256xf32>
    %9 = arith.addf %7, %8 : vector<6x256xf32>
    %10 = arith.mulf %6, %6 : vector<6x256xf32>
    %11 = arith.mulf %9, %9 : vector<6x256xf32>
    %12 = arith.addf %10, %11 : vector<6x256xf32>
    %13 = math.sqrt %12 : vector<6x256xf32>
    %c0_10 = arith.constant 0 : index
    %c0_11 = arith.constant 0 : index
    %14 = vector.load %arg4[%c0_10, %c0_11] : memref<6x256xf32, #tpu.memory_space<vmem>>, vector<6x256xf32>
    tpu.vector_store %arg4[%c0_10, %c0_11], %6 {strides = array<i32>} : memref<6x256xf32, #tpu.memory_space<vmem>>, vector<6x256xf32>,
    %c0_12 = arith.constant 0 : index
    %c0_13 = arith.constant 0 : index
    %15 = vector.load %arg5[%c0_12, %c0_13] : memref<6x256xf32, #tpu.memory_space<vmem>>, vector<6x256xf32>
    tpu.vector_store %arg5[%c0_12, %c0_13], %9 {strides = array<i32>} : memref<6x256xf32, #tpu.memory_space<vmem>>, vector<6x256xf32>,
    %c0_14 = arith.constant 0 : index
    %c0_15 = arith.constant 0 : index
    %16 = vector.load %arg6[%c0_14, %c0_15] : memref<6x256xf32, #tpu.memory_space<vmem>>, vector<6x256xf32>
    tpu.vector_store %arg6[%c0_14, %c0_15], %13 {strides = array<i32>} : memref<6x256xf32, #tpu.memory_space<vmem>>, vector<6x256xf32>,
    %cst_16 = arith.constant 1.000000e+00 : f32
    %17 = vector.broadcast %cst_16 : f32 to vector<6x256xf32>
    %18 = arith.addf %13, %17 : vector<6x256xf32>
    %19 = math.log %18 : vector<6x256xf32>
    %c0_17 = arith.constant 0 : index
    %c0_18 = arith.constant 0 : index
    %20 = vector.load %arg7[%c0_17, %c0_18] : memref<6x256xf32, #tpu.memory_space<vmem>>, vector<6x256xf32>
    tpu.vector_store %arg7[%c0_17, %c0_18], %19 {strides = array<i32>} : memref<6x256xf32, #tpu.memory_space<vmem>>, vector<6x256xf32>,
    %21 = arith.mulf %0, %0 : vector<6x256xf32>
    %22 = arith.mulf %1, %1 : vector<6x256xf32>
    %23 = arith.addf %21, %22 : vector<6x256xf32>
    %24 = math.sqrt %23 : vector<6x256xf32>
    %cst_19 = arith.constant 0.000000e+00 : f32
    %25 = vector.broadcast %cst_19 : f32 to vector<6x256xf32>
    %26 = arith.cmpf ogt, %24, %25 : vector<6x256xf32>
    %cst_20 = arith.constant 1.000000e+00 : f32
    %27 = vector.broadcast %cst_20 : f32 to vector<6x256xf32>
    %28 = arith.select %26, %24, %27 : vector<6x256xi1>, vector<6x256xf32>
    %29 = tpu.reciprocal %28 {approx = true} : vector<6x256xf32> -> vector<6x256xf32>
    %cst_21 = arith.constant 0.000000e+00 : f32
    %30 = vector.broadcast %cst_21 : f32 to vector<6x256xf32>
    %31 = arith.cmpf ogt, %24, %30 : vector<6x256xf32>
    %32 = arith.mulf %0, %29 : vector<6x256xf32>
    %cst_22 = arith.constant 1.000000e+00 : f32
    %33 = vector.broadcast %cst_22 : f32 to vector<6x256xf32>
    %34 = arith.select %31, %32, %33 : vector<6x256xi1>, vector<6x256xf32>
    %c0_23 = arith.constant 0 : index
    %c0_24 = arith.constant 0 : index
    %35 = vector.load %arg8[%c0_23, %c0_24] : memref<6x256xf32, #tpu.memory_space<vmem>>, vector<6x256xf32>
    tpu.vector_store %arg8[%c0_23, %c0_24], %34 {strides = array<i32>} : memref<6x256xf32, #tpu.memory_space<vmem>>, vector<6x256xf32>,
    %cst_25 = arith.constant 0.000000e+00 : f32
    %36 = vector.broadcast %cst_25 : f32 to vector<6x256xf32>
    %37 = arith.cmpf ogt, %24, %36 : vector<6x256xf32>
    %38 = arith.mulf %1, %29 : vector<6x256xf32>
    %cst_26 = arith.constant 0.000000e+00 : f32
    %39 = vector.broadcast %cst_26 : f32 to vector<6x256xf32>
    %40 = arith.select %37, %38, %39 : vector<6x256xi1>, vector<6x256xf32>
    %c0_27 = arith.constant 0 : index
    %c0_28 = arith.constant 0 : index
    %41 = vector.load %arg9[%c0_27, %c0_28] : memref<6x256xf32, #tpu.memory_space<vmem>>, vector<6x256xf32>
    tpu.vector_store %arg9[%c0_27, %c0_28], %40 {strides = array<i32>} : memref<6x256xf32, #tpu.memory_space<vmem>>, vector<6x256xf32>,
    return
  }
}

</mosaic_0001>

<bundles_post_ra>
// kernel: tpu_custom_call.1
= control target key start
LH: loop header
LB: loop body
LE: loop exit
PB: predicated region body
PF: predicated region fallthrough
CT: control target
= control target key end

     0   :  { %15 = vsyncpa [#allocation3], 0  ;;  %s1527_s0 = inlined_call_operand.hbm [shape: f32[6,256], index: 0, kind: input, shape index: {}]   ;;  %s1528_s1 = inlined_call_operand.hbm [shape: f32[6,256], index: 1, kind: input, shape index: {}]   ;;  %s1529_s2 = inlined_call_operand.hbm [shape: f32[256,256], index: 2, kind: input, shape index: {}]   ;;  %s1530_s3 = inlined_call_operand.hbm [shape: f32[256,256], index: 3, kind: input, shape index: {}]   ;;  %s1531_s4 = inlined_call_operand.hbm [shape: f32[6,256], index: 4, kind: output, shape index: {0}]   ;;  %s1532_s5 = inlined_call_operand.hbm [shape: f32[6,256], index: 5, kind: output, shape index: {1}]   ;;  %s1533_s6 = inlined_call_operand.hbm [shape: f32[6,256], index: 6, kind: output, shape index: {2}]   ;;  %s1534_s7 = inlined_call_operand.hbm [shape: f32[6,256], index: 7, kind: output, shape index: {3}]   ;;  %s1535_s8 = inlined_call_operand.hbm [shape: f32[6,256], index: 8, kind: output, shape index: {4}]   ;;  %s1536_s9 = inlined_call_operand.hbm [shape: f32[6,256], index: 9, kind: output, shape index: {5}]  }
   0x1   :  { %16 = vsyncpa [#allocation6], 0 }
   0x2   :  { %17 = vsyncpa [#allocation9], 0 }
   0x3   :  { %18 = vsyncpa [#allocation4], 0 }
   0x4   :  { %19 = vsyncpa [#allocation12], 0 }
   0x5   :  { %20 = vsyncpa [#allocation15], 0 }
   0x6   :  { %21 = vsyncpa [#allocation18], 0  ;;  %s895_s30 = smov [#allocation5]   ;;  %s896_s11 = smov [#allocation2]  }
   0x7   :  { %s38_s10 = sshll.u32 %s895_s30, 4  ;;  %s28_s12 = sshll.u32 %s896_s11, 4  ;;  %s39_s10 = int_to_ptr.vmem [resolvable:$true] %s38_s10  ;;  %s29_s12 = int_to_ptr.vmem [resolvable:$true] %s28_s12 }
   0x8   :  { %s689_s13 = scalar_lea.vmem %s39_s10, 256  ;;  %p694_p1 = scmp.lt.s32.totalorder %s39_s10, %s39_s10 }
   0x9   :  { %p690_p0 = scmp.ne.s32.totalorder %s39_s10, %s689_s13  ;;  %p695_p2 = scmp.lt.s32.totalorder %s689_s13, %s689_s13 }
   0xb   :  { %p696_p3 = por %p695_p2, %p694_p1 }
   0xd   :  { %p697_p4 = pnand %p696_p3, %p690_p0 }
   0xf   :  { %700 = shalt.err (!%p697_p4)
}
  0x10   :  { %41 = dma.hbm_to_vmem [thread:$0]  %s1528_s1, 256, %s39_s10, [#allocation6]  }
  0x11   :  { %s709_s16 = scalar_lea.vmem %s29_s12, 256  ;;  %p714_p6 = scmp.lt.s32.totalorder %s29_s12, %s29_s12 }
  0x12   :  { %p710_p5 = scmp.ne.s32.totalorder %s29_s12, %s709_s16  ;;  %p715_p7 = scmp.lt.s32.totalorder %s709_s16, %s709_s16 }
  0x14   :  { %p716_p8 = por %p715_p7, %p714_p6 }
  0x16   :  { %p717_p9 = pnand %p716_p8, %p710_p5 }
  0x18   :  { %720 = shalt.err (!%p717_p9)
}
  0x19   :  { %31 = dma.hbm_to_vmem [thread:$0]  %s1527_s0, 256, %s29_s12, [#allocation3]  }
  0x1a   :  { %s897_s19 = smov [#allocation7]  }
  0x1b   :  { %s47_s20 = sshll.u32 %s897_s19, 4  ;;  %s48_s20 = int_to_ptr.vmem [resolvable:$true] %s47_s20 }
  0x1c   :  { %s729_s21 = scalar_lea.vmem %s48_s20, 8192  ;;  %p734_p11 = scmp.lt.s32.totalorder %s48_s20, %s48_s20 }
  0x1d   :  { %p730_p10 = scmp.ne.s32.totalorder %s48_s20, %s729_s21  ;;  %p735_p12 = scmp.lt.s32.totalorder %s729_s21, %s729_s21 }
  0x1f   :  { %p736_p13 = por %p735_p12, %p734_p11 }
  0x21   :  { %p737_p0 = pnand %p736_p13, %p730_p10 }
  0x23   :  { %740 = shalt.err (!%p737_p0)
}
  0x24   :  { %s898_s1 = smov 256   ;;  %s899_s22 = smov 16  }
  0x25   :  { %53 = dma.hbm_to_vmem [thread:$0]  %s1529_s2, 8192, %s48_s20, [#allocation6], %s898_s1, %s898_s1, %s899_s22  }
  0x26   :  { %s900_s25 = smov [#allocation8]  }
  0x27   :  { %s59_s26 = sshll.u32 %s900_s25, 4  ;;  %s60_s26 = int_to_ptr.vmem [resolvable:$true] %s59_s26 }
  0x28   :  { %s749_s0 = scalar_lea.vmem %s60_s26, 8192  ;;  %p754_p2 = scmp.lt.s32.totalorder %s60_s26, %s60_s26 }
  0x29   :  { %p750_p1 = scmp.ne.s32.totalorder %s60_s26, %s749_s0  ;;  %p755_p3 = scmp.lt.s32.totalorder %s749_s0, %s749_s0 }
  0x2b   :  { %p756_p4 = por %p755_p3, %p754_p2 }
  0x2d   :  { %p757_p5 = pnand %p756_p4, %p750_p1 }
  0x2f   :  { %760 = shalt.err (!%p757_p5)
}
  0x30   :  { %65 = dma.hbm_to_vmem [thread:$0]  %s1530_s3, 8192, %s60_s26, [#allocation9], %s898_s1, %s898_s1, %s899_s22  }
  0x31   :  { %881 = dma.done.wait [#allocation3], 256  }
  0x32   :  { %882 = vsyncadd [#allocation3], 4294967040 }
  0x33   :  { %883 = dma.done.wait [#allocation6], 8448  }
  0x34   :  { %884 = vsyncadd [#allocation6], 4294958848 }
  0x35   :  { %885 = dma.done.wait [#allocation9], 8192  }
  0x36   :  { %886 = vsyncadd [#allocation9], 4294959104  ;;  %v969_v0 = vld [vmem:[#allocation7 + $0xf8] sm:$0xff]  ;;  %v973_v2 = vld [vmem:[#allocation7 + $0xf0] sm:$0xff]  ;;  %s901_s2 = smov [#allocation17]  }
  0x37   :  { %v971_v1 = vld [vmem:[#allocation8 + $0xf8] sm:$0xff]  ;;  %210 = vmatprep.subr.mxu0 %v969_v0  ;;  %v977_v3 = vld [vmem:[#allocation8 + $0xf0] sm:$0xff]  ;;  %v979_v4 = vld [vmem:[#allocation7 + $0xe8] sm:$0xff]  ;;  %s624_s3 = sshll.u32 %s901_s2, 4  ;;  %s625_s3 = int_to_ptr.vmem [resolvable:$true] %s624_s3 }
  0x38   :  { %281 = vmatprep.subr.mxu1 %v971_v1  ;;  %v981_v5 = vld [vmem:[#allocation8 + $0xe8] sm:$0xff]  ;;  %211 = vmatpush1.msra.mxu0 %v973_v2  ;;  %v985_v6 = vld [vmem:[#allocation7 + $0xe0] sm:$0xff]  ;;  %v989_v8 = vld [vmem:[#allocation7 + $0xd8] sm:$0xff]  ;;  %s761_s29 = scalar_lea.vmem %s625_s3, 256  ;;  %p766_p7 = scmp.lt.s32.totalorder %s625_s3, %s625_s3 }
  0x39   :  { %282 = vmatpush1.msra.mxu1 %v977_v3  ;;  %v987_v7 = vld [vmem:[#allocation8 + $0xe0] sm:$0xff]  ;;  %212 = vmatprep.subr.mxu0 %v979_v4  ;;  %v993_v9 = vld [vmem:[#allocation8 + $0xd8] sm:$0xff]  ;;  %v995_v10 = vld [vmem:[#allocation7 + $0xd0] sm:$0xff]  ;;  %p762_p6 = scmp.ne.s32.totalorder %s625_s3, %s761_s29  ;;  %p767_p8 = scmp.lt.s32.totalorder %s761_s29, %s761_s29 }
  0x3a   :  { %283 = vmatprep.subr.mxu1 %v981_v5  ;;  %v997_v11 = vld [vmem:[#allocation8 + $0xd0] sm:$0xff]  ;;  %213 = vmatpush1.msra.mxu0 %v985_v6  ;;  %v1001_v12 = vld [vmem:[#allocation7 + $0xc8] sm:$0xff]  ;;  %v1007_v14 = vld [vmem:[#allocation7 + $0xc0] sm:$0xff] }
  0x3b   :  { %284 = vmatpush1.msra.mxu1 %v987_v7  ;;  %v1003_v13 = vld [vmem:[#allocation8 + $0xc8] sm:$0xff]  ;;  %214 = vmatprep.subr.mxu0 %v989_v8  ;;  %v1009_v15 = vld [vmem:[#allocation8 + $0xc0] sm:$0xff]  ;;  %v1013_v16 = vld [vmem:[#allocation7 + $0xb8] sm:$0xff]  ;;  %p768_p9 = por %p767_p8, %p766_p7 }
  0x3c   :  { %285 = vmatprep.subr.mxu1 %v993_v9  ;;  %215 = vmatpush1.msra.mxu0 %v995_v10  ;;  %v1015_v17 = vld [vmem:[#allocation8 + $0xb8] sm:$0xff]  ;;  %v1019_v18 = vld [vmem:[#allocation7 + $0xb0] sm:$0xff]  ;;  %v1025_v20 = vld [vmem:[#allocation7 + $0xa8] sm:$0xff] }
  0x3d   :  { %286 = vmatpush1.msra.mxu1 %v997_v11  ;;  %216 = vmatprep.subr.mxu0 %v1001_v12  ;;  %v1021_v19 = vld [vmem:[#allocation8 + $0xb0] sm:$0xff]  ;;  %v1027_v21 = vld [vmem:[#allocation8 + $0xa8] sm:$0xff]  ;;  %v1031_v22 = vld [vmem:[#allocation7 + $0xa0] sm:$0xff]  ;;  %p769_p10 = pnand %p768_p9, %p762_p6 }
  0x3e   :  { %287 = vmatprep.subr.mxu1 %v1003_v13  ;;  %217 = vmatpush1.msra.mxu0 %v1007_v14  ;;  %v1033_v23 = vld [vmem:[#allocation8 + $0xa0] sm:$0xff]  ;;  %v1037_v24 = vld [vmem:[#allocation7 + $0x98] sm:$0xff]  ;;  %v1043_v26 = vld [vmem:[#allocation7 + $0x90] sm:$0xff] }
  0x3f   :  { %288 = vmatpush1.msra.mxu1 %v1009_v15  ;;  %218 = vmatprep.subr.mxu0 %v1013_v16  ;;  %v1039_v25 = vld [vmem:[#allocation8 + $0x98] sm:$0xff]  ;;  %v1045_v27 = vld [vmem:[#allocation8 + $0x90] sm:$0xff]  ;;  %v1049_v28 = vld [vmem:[#allocation7 + $0x88] sm:$0xff] }
  0x40   :  { %289 = vmatprep.subr.mxu1 %v1015_v17  ;;  %219 = vmatpush1.msra.mxu0 %v1019_v18  ;;  %v1051_v29 = vld [vmem:[#allocation8 + $0x88] sm:$0xff]  ;;  %v1055_v30 = vld [vmem:[#allocation7 + $0x80] sm:$0xff]  ;;  %v1061_v32 = vld [vmem:[#allocation7 + $0x78] sm:$0xff] }
  0x41   :  { %290 = vmatpush1.msra.mxu1 %v1021_v19  ;;  %220 = vmatprep.subr.mxu0 %v1025_v20  ;;  %v1057_v31 = vld [vmem:[#allocation8 + $0x80] sm:$0xff]  ;;  %v1063_v33 = vld [vmem:[#allocation8 + $0x78] sm:$0xff]  ;;  %v1067_v34 = vld [vmem:[#allocation7 + $0x70] sm:$0xff] }
  0x42   :  { %291 = vmatprep.subr.mxu1 %v1027_v21  ;;  %221 = vmatpush1.msra.mxu0 %v1031_v22  ;;  %v1069_v35 = vld [vmem:[#allocation8 + $0x70] sm:$0xff]  ;;  %v1073_v36 = vld [vmem:[#allocation7 + $0x68] sm:$0xff]  ;;  %v1079_v38 = vld [vmem:[#allocation7 + $0x60] sm:$0xff] }
  0x43   :  { %292 = vmatpush1.msra.mxu1 %v1033_v23  ;;  %222 = vmatprep.subr.mxu0 %v1037_v24  ;;  %v1075_v37 = vld [vmem:[#allocation8 + $0x68] sm:$0xff]  ;;  %v1081_v39 = vld [vmem:[#allocation8 + $0x60] sm:$0xff]  ;;  %v1085_v40 = vld [vmem:[#allocation7 + $0x58] sm:$0xff] }
  0x44   :  { %293 = vmatprep.subr.mxu1 %v1039_v25  ;;  %223 = vmatpush1.msra.mxu0 %v1043_v26  ;;  %v1087_v41 = vld [vmem:[#allocation8 + $0x58] sm:$0xff]  ;;  %v1091_v42 = vld [vmem:[#allocation7 + $0x50] sm:$0xff]  ;;  %v1097_v44 = vld [vmem:[#allocation7 + $0x48] sm:$0xff] }
  0x45   :  { %294 = vmatpush1.msra.mxu1 %v1045_v27  ;;  %224 = vmatprep.subr.mxu0 %v1049_v28  ;;  %v1093_v43 = vld [vmem:[#allocation8 + $0x50] sm:$0xff]  ;;  %v1099_v45 = vld [vmem:[#allocation8 + $0x48] sm:$0xff]  ;;  %v1103_v46 = vld [vmem:[#allocation7 + $0x40] sm:$0xff] }
  0x46   :  { %295 = vmatprep.subr.mxu1 %v1051_v29  ;;  %225 = vmatpush1.msra.mxu0 %v1055_v30  ;;  %v1105_v47 = vld [vmem:[#allocation8 + $0x40] sm:$0xff]  ;;  %v1109_v48 = vld [vmem:[#allocation7 + $0x38] sm:$0xff]  ;;  %v1115_v50 = vld [vmem:[#allocation7 + $0x30] sm:$0xff] }
  0x47   :  { %296 = vmatpush1.msra.mxu1 %v1057_v31  ;;  %226 = vmatprep.subr.mxu0 %v1061_v32  ;;  %v1111_v49 = vld [vmem:[#allocation8 + $0x38] sm:$0xff]  ;;  %v1117_v51 = vld [vmem:[#allocation8 + $0x30] sm:$0xff]  ;;  %v1121_v52 = vld [vmem:[#allocation7 + $0x28] sm:$0xff] }
  0x48   :  { %297 = vmatprep.subr.mxu1 %v1063_v33  ;;  %227 = vmatpush1.msra.mxu0 %v1067_v34  ;;  %v1123_v53 = vld [vmem:[#allocation8 + $0x28] sm:$0xff]  ;;  %v1127_v54 = vld [vmem:[#allocation7 + $0x20] sm:$0xff]  ;;  %v1133_v56 = vld [vmem:[#allocation7 + $0x18] sm:$0xff] }
  0x49   :  { %298 = vmatpush1.msra.mxu1 %v1069_v35  ;;  %228 = vmatprep.subr.mxu0 %v1073_v36  ;;  %1605 = vst [vmem:[#allocation26_spill] sm:$0xff] %v1123_v53  ;;  %1606 = vst [vmem:[#allocation27_spill] sm:$0xff] %v1127_v54  ;;  %v1129_v55 = vld [vmem:[#allocation8 + $0x20] sm:$0xff]  ;;  %v1135_v57 = vld [vmem:[#allocation8 + $0x18] sm:$0xff] }
  0x4a   :  { %299 = vmatprep.subr.mxu1 %v1075_v37  ;;  %229 = vmatpush1.msra.mxu0 %v1079_v38  ;;  %1607 = vst [vmem:[#allocation28_spill] sm:$0xff] %v1129_v55  ;;  %1608 = vst [vmem:[#allocation29_spill] sm:$0xff] %v1133_v56  ;;  %v1139_v58 = vld [vmem:[#allocation7 + $0x10] sm:$0xff]  ;;  %v1145_v60 = vld [vmem:[#allocation7 + $0x8] sm:$0xff] }
  0x4b   :  { %300 = vmatpush1.msra.mxu1 %v1081_v39  ;;  %230 = vmatprep.subr.mxu0 %v1085_v40  ;;  %1609 = vst [vmem:[#allocation30_spill] sm:$0xff] %v1135_v57  ;;  %1610 = vst [vmem:[#allocation31_spill] sm:$0xff] %v1139_v58  ;;  %v1141_v59 = vld [vmem:[#allocation8 + $0x10] sm:$0xff]  ;;  %v1147_v61 = vld [vmem:[#allocation8 + $0x8] sm:$0xff] }
  0x4c   :  { %301 = vmatprep.subr.mxu1 %v1087_v41  ;;  %231 = vmatpush1.msra.mxu0 %v1091_v42  ;;  %1611 = vst [vmem:[#allocation32_spill] sm:$0xff] %v1141_v59  ;;  %1612 = vst [vmem:[#allocation33_spill] sm:$0xff] %v1145_v60  ;;  %v1151_v62 = vld [vmem:[#allocation7] sm:$0xff] }
  0x4d   :  { %302 = vmatpush1.msra.mxu1 %v1093_v43  ;;  %232 = vmatprep.subr.mxu0 %v1097_v44  ;;  %1613 = vst [vmem:[#allocation34_spill] sm:$0xff] %v1147_v61  ;;  %1614 = vst [vmem:[#allocation35_spill] sm:$0xff] %v1151_v62  ;;  %v1153_v63 = vld [vmem:[#allocation8] sm:$0xff] }
  0x4e   :  { %303 = vmatprep.subr.mxu1 %v1099_v45  ;;  %233 = vmatpush1.msra.mxu0 %v1103_v46  ;;  %1615 = vst [vmem:[#allocation36_spill] sm:$0xff] %v1153_v63 }
  0x4f   :  { %304 = vmatpush1.msra.mxu1 %v1105_v47  ;;  %234 = vmatprep.subr.mxu0 %v1109_v48 }
  0x50   :  { %305 = vmatprep.subr.mxu1 %v1111_v49  ;;  %235 = vmatpush1.msra.mxu0 %v1115_v50 }
  0x51   :  { %306 = vmatpush1.msra.mxu1 %v1117_v51  ;;  %236 = vmatprep.subr.mxu0 %v1121_v52 }
  0x52   :  { %307 = vmatprep.subr.mxu1 %v1123_v53  ;;  %237 = vmatpush1.msra.mxu0 %v1127_v54  ;;  %v1157_v53 = vld [vmem:[#allocation7 + $0x1f8] sm:$0xff] }
  0x53   :  { %308 = vmatpush1.msra.mxu1 %v1129_v55  ;;  %238 = vmatprep.subr.mxu0 %v1133_v56  ;;  %1616 = vst [vmem:[#allocation37_spill] sm:$0xff] %v1157_v53  ;;  %v1159_v54 = vld [vmem:[#allocation8 + $0x1f8] sm:$0xff]  ;;  %v1163_v55 = vld [vmem:[#allocation7 + $0x1f0] sm:$0xff] }
  0x54   :  { %309 = vmatprep.subr.mxu1 %v1135_v57  ;;  %239 = vmatpush1.msra.mxu0 %v1139_v58  ;;  %1617 = vst [vmem:[#allocation38_spill] sm:$0xff] %v1159_v54  ;;  %1618 = vst [vmem:[#allocation39_spill] sm:$0xff] %v1163_v55  ;;  %v1165_v56 = vld [vmem:[#allocation8 + $0x1f0] sm:$0xff]  ;;  %v1169_v57 = vld [vmem:[#allocation7 + $0x1e8] sm:$0xff] }
  0x55   :  { %310 = vmatpush1.msra.mxu1 %v1141_v59  ;;  %240 = vmatprep.subr.mxu0 %v1145_v60  ;;  %1619 = vst [vmem:[#allocation40_spill] sm:$0xff] %v1165_v56  ;;  %1620 = vst [vmem:[#allocation41_spill] sm:$0xff] %v1169_v57  ;;  %v1171_v58 = vld [vmem:[#allocation8 + $0x1e8] sm:$0xff]  ;;  %v1175_v59 = vld [vmem:[#allocation7 + $0x1e0] sm:$0xff] }
  0x56   :  { %311 = vmatprep.subr.mxu1 %v1147_v61  ;;  %241 = vmatpush1.msra.mxu0 %v1151_v62  ;;  %1621 = vst [vmem:[#allocation42_spill] sm:$0xff] %v1171_v58  ;;  %1622 = vst [vmem:[#allocation43_spill] sm:$0xff] %v1175_v59  ;;  %v1177_v60 = vld [vmem:[#allocation8 + $0x1e0] sm:$0xff]  ;;  %v1181_v61 = vld [vmem:[#allocation7 + $0x1d8] sm:$0xff] }
  0x57   :  { %312 = vmatpush1.msra.mxu1 %v1153_v63  ;;  %242 = vmatprep.subr.mxu0 %v1157_v53  ;;  %1623 = vst [vmem:[#allocation44_spill] sm:$0xff] %v1177_v60  ;;  %1624 = vst [vmem:[#allocation45_spill] sm:$0xff] %v1181_v61  ;;  %v1183_v62 = vld [vmem:[#allocation8 + $0x1d8] sm:$0xff]  ;;  %v1187_v63 = vld [vmem:[#allocation7 + $0x1d0] sm:$0xff] }
  0x58   :  { %313 = vmatprep.subr.mxu1 %v1159_v54  ;;  %243 = vmatpush2.msra.mxu0 %v1163_v55  ;;  %1625 = vst [vmem:[#allocation46_spill] sm:$0xff] %v1183_v62  ;;  %1626 = vst [vmem:[#allocation47_spill] sm:$0xff] %v1187_v63  ;;  %v1189_v53 = vld [vmem:[#allocation8 + $0x1d0] sm:$0xff]  ;;  %v1193_v54 = vld [vmem:[#allocation7 + $0x1c8] sm:$0xff] }
  0x59   :  { %314 = vmatpush2.msra.mxu1 %v1165_v56  ;;  %244 = vmatprep.subr.mxu0 %v1169_v57  ;;  %1627 = vst [vmem:[#allocation48_spill] sm:$0xff] %v1189_v53  ;;  %1628 = vst [vmem:[#allocation49_spill] sm:$0xff] %v1193_v54  ;;  %v1195_v55 = vld [vmem:[#allocation8 + $0x1c8] sm:$0xff]  ;;  %v1199_v56 = vld [vmem:[#allocation7 + $0x1c0] sm:$0xff] }
  0x5a   :  { %315 = vmatprep.subr.mxu1 %v1171_v58  ;;  %245 = vmatpush2.msra.mxu0 %v1175_v59  ;;  %1629 = vst [vmem:[#allocation50_spill] sm:$0xff] %v1195_v55  ;;  %1630 = vst [vmem:[#allocation51_spill] sm:$0xff] %v1199_v56  ;;  %v1201_v57 = vld [vmem:[#allocation8 + $0x1c0] sm:$0xff]  ;;  %v1205_v58 = vld [vmem:[#allocation7 + $0x1b8] sm:$0xff] }
  0x5b   :  { %316 = vmatpush2.msra.mxu1 %v1177_v60  ;;  %246 = vmatprep.subr.mxu0 %v1181_v61  ;;  %1631 = vst [vmem:[#allocation52_spill] sm:$0xff] %v1201_v57  ;;  %1632 = vst [vmem:[#allocation53_spill] sm:$0xff] %v1205_v58  ;;  %v1207_v59 = vld [vmem:[#allocation8 + $0x1b8] sm:$0xff]  ;;  %v1211_v60 = vld [vmem:[#allocation7 + $0x1b0] sm:$0xff] }
  0x5c   :  { %317 = vmatprep.subr.mxu1 %v1183_v62  ;;  %247 = vmatpush2.msra.mxu0 %v1187_v63  ;;  %1633 = vst [vmem:[#allocation54_spill] sm:$0xff] %v1207_v59  ;;  %1634 = vst [vmem:[#allocation55_spill] sm:$0xff] %v1211_v60  ;;  %v1213_v61 = vld [vmem:[#allocation8 + $0x1b0] sm:$0xff]  ;;  %v1217_v62 = vld [vmem:[#allocation7 + $0x1a8] sm:$0xff] }
  0x5d   :  { %318 = vmatpush2.msra.mxu1 %v1189_v53  ;;  %248 = vmatprep.subr.mxu0 %v1193_v54  ;;  %1635 = vst [vmem:[#allocation56_spill] sm:$0xff] %v1213_v61  ;;  %1636 = vst [vmem:[#allocation57_spill] sm:$0xff] %v1217_v62  ;;  %v1219_v63 = vld [vmem:[#allocation8 + $0x1a8] sm:$0xff]  ;;  %v1223_v53 = vld [vmem:[#allocation7 + $0x1a0] sm:$0xff] }
  0x5e   :  { %319 = vmatprep.subr.mxu1 %v1195_v55  ;;  %249 = vmatpush2.msra.mxu0 %v1199_v56  ;;  %1637 = vst [vmem:[#allocation58_spill] sm:$0xff] %v1219_v63  ;;  %1638 = vst [vmem:[#allocation59_spill] sm:$0xff] %v1223_v53  ;;  %v1225_v54 = vld [vmem:[#allocation8 + $0x1a0] sm:$0xff]  ;;  %v1229_v55 = vld [vmem:[#allocation7 + $0x198] sm:$0xff] }
  0x5f   :  { %320 = vmatpush2.msra.mxu1 %v1201_v57  ;;  %250 = vmatprep.subr.mxu0 %v1205_v58  ;;  %1639 = vst [vmem:[#allocation60_spill] sm:$0xff] %v1225_v54  ;;  %1640 = vst [vmem:[#allocation61_spill] sm:$0xff] %v1229_v55  ;;  %v1231_v56 = vld [vmem:[#allocation8 + $0x198] sm:$0xff]  ;;  %v1235_v57 = vld [vmem:[#allocation7 + $0x190] sm:$0xff] }
  0x60   :  { %321 = vmatprep.subr.mxu1 %v1207_v59  ;;  %251 = vmatpush2.msra.mxu0 %v1211_v60  ;;  %1641 = vst [vmem:[#allocation62_spill] sm:$0xff] %v1231_v56  ;;  %1642 = vst [vmem:[#allocation63_spill] sm:$0xff] %v1235_v57  ;;  %v1237_v58 = vld [vmem:[#allocation8 + $0x190] sm:$0xff]  ;;  %v1241_v59 = vld [vmem:[#allocation7 + $0x188] sm:$0xff] }
  0x61   :  { %322 = vmatpush2.msra.mxu1 %v1213_v61  ;;  %252 = vmatprep.subr.mxu0 %v1217_v62  ;;  %1643 = vst [vmem:[#allocation64_spill] sm:$0xff] %v1237_v58  ;;  %1644 = vst [vmem:[#allocation65_spill] sm:$0xff] %v1241_v59  ;;  %v1243_v60 = vld [vmem:[#allocation8 + $0x188] sm:$0xff]  ;;  %v1247_v61 = vld [vmem:[#allocation7 + $0x180] sm:$0xff] }
  0x62   :  { %323 = vmatprep.subr.mxu1 %v1219_v63  ;;  %253 = vmatpush2.msra.mxu0 %v1223_v53  ;;  %1645 = vst [vmem:[#allocation66_spill] sm:$0xff] %v1243_v60  ;;  %1646 = vst [vmem:[#allocation67_spill] sm:$0xff] %v1247_v61  ;;  %v1249_v62 = vld [vmem:[#allocation8 + $0x180] sm:$0xff]  ;;  %v1253_v63 = vld [vmem:[#allocation7 + $0x178] sm:$0xff] }
  0x63   :  { %324 = vmatpush2.msra.mxu1 %v1225_v54  ;;  %254 = vmatprep.subr.mxu0 %v1229_v55  ;;  %1647 = vst [vmem:[#allocation68_spill] sm:$0xff] %v1249_v62  ;;  %1648 = vst [vmem:[#allocation69_spill] sm:$0xff] %v1253_v63  ;;  %v1255_v53 = vld [vmem:[#allocation8 + $0x178] sm:$0xff]  ;;  %v1259_v54 = vld [vmem:[#allocation7 + $0x170] sm:$0xff] }
  0x64   :  { %325 = vmatprep.subr.mxu1 %v1231_v56  ;;  %255 = vmatpush2.msra.mxu0 %v1235_v57  ;;  %1649 = vst [vmem:[#allocation70_spill] sm:$0xff] %v1255_v53  ;;  %1650 = vst [vmem:[#allocation71_spill] sm:$0xff] %v1259_v54  ;;  %v1261_v55 = vld [vmem:[#allocation8 + $0x170] sm:$0xff]  ;;  %v1265_v56 = vld [vmem:[#allocation7 + $0x168] sm:$0xff] }
  0x65   :  { %326 = vmatpush2.msra.mxu1 %v1237_v58  ;;  %256 = vmatprep.subr.mxu0 %v1241_v59  ;;  %1651 = vst [vmem:[#allocation72_spill] sm:$0xff] %v1261_v55  ;;  %1652 = vst [vmem:[#allocation73_spill] sm:$0xff] %v1265_v56  ;;  %v1267_v57 = vld [vmem:[#allocation8 + $0x168] sm:$0xff]  ;;  %v1271_v58 = vld [vmem:[#allocation7 + $0x160] sm:$0xff] }
  0x66   :  { %327 = vmatprep.subr.mxu1 %v1243_v60  ;;  %257 = vmatpush2.msra.mxu0 %v1247_v61  ;;  %1653 = vst [vmem:[#allocation74_spill] sm:$0xff] %v1267_v57  ;;  %1654 = vst [vmem:[#allocation75_spill] sm:$0xff] %v1271_v58  ;;  %v1273_v59 = vld [vmem:[#allocation8 + $0x160] sm:$0xff]  ;;  %v1277_v60 = vld [vmem:[#allocation7 + $0x158] sm:$0xff] }
  0x67   :  { %328 = vmatpush2.msra.mxu1 %v1249_v62  ;;  %258 = vmatprep.subr.mxu0 %v1253_v63  ;;  %1655 = vst [vmem:[#allocation76_spill] sm:$0xff] %v1273_v59  ;;  %1656 = vst [vmem:[#allocation77_spill] sm:$0xff] %v1277_v60  ;;  %v1279_v61 = vld [vmem:[#allocation8 + $0x158] sm:$0xff]  ;;  %v1283_v62 = vld [vmem:[#allocation7 + $0x150] sm:$0xff] }
  0x68   :  { %329 = vmatprep.subr.mxu1 %v1255_v53  ;;  %259 = vmatpush2.msra.mxu0 %v1259_v54  ;;  %1657 = vst [vmem:[#allocation78_spill] sm:$0xff] %v1279_v61  ;;  %1658 = vst [vmem:[#allocation79_spill] sm:$0xff] %v1283_v62  ;;  %v1285_v63 = vld [vmem:[#allocation8 + $0x150] sm:$0xff]  ;;  %v1289_v53 = vld [vmem:[#allocation7 + $0x148] sm:$0xff] }
  0x69   :  { %330 = vmatpush2.msra.mxu1 %v1261_v55  ;;  %260 = vmatprep.subr.mxu0 %v1265_v56  ;;  %1659 = vst [vmem:[#allocation80_spill] sm:$0xff] %v1285_v63  ;;  %1660 = vst [vmem:[#allocation81_spill] sm:$0xff] %v1289_v53  ;;  %v1291_v54 = vld [vmem:[#allocation8 + $0x148] sm:$0xff]  ;;  %v1295_v55 = vld [vmem:[#allocation7 + $0x140] sm:$0xff] }
  0x6a   :  { %331 = vmatprep.subr.mxu1 %v1267_v57  ;;  %261 = vmatpush2.msra.mxu0 %v1271_v58  ;;  %1661 = vst [vmem:[#allocation82_spill] sm:$0xff] %v1291_v54  ;;  %1662 = vst [vmem:[#allocation83_spill] sm:$0xff] %v1295_v55  ;;  %v1297_v56 = vld [vmem:[#allocation8 + $0x140] sm:$0xff]  ;;  %v1301_v57 = vld [vmem:[#allocation7 + $0x138] sm:$0xff] }
  0x6b   :  { %332 = vmatpush2.msra.mxu1 %v1273_v59  ;;  %262 = vmatprep.subr.mxu0 %v1277_v60  ;;  %1663 = vst [vmem:[#allocation84_spill] sm:$0xff] %v1297_v56  ;;  %1664 = vst [vmem:[#allocation85_spill] sm:$0xff] %v1301_v57  ;;  %v1303_v58 = vld [vmem:[#allocation8 + $0x138] sm:$0xff]  ;;  %v1307_v59 = vld [vmem:[#allocation7 + $0x130] sm:$0xff] }
  0x6c   :  { %333 = vmatprep.subr.mxu1 %v1279_v61  ;;  %263 = vmatpush2.msra.mxu0 %v1283_v62  ;;  %1665 = vst [vmem:[#allocation86_spill] sm:$0xff] %v1303_v58  ;;  %1666 = vst [vmem:[#allocation87_spill] sm:$0xff] %v1307_v59  ;;  %v1309_v60 = vld [vmem:[#allocation8 + $0x130] sm:$0xff]  ;;  %v1313_v61 = vld [vmem:[#allocation7 + $0x128] sm:$0xff] }
  0x6d   :  { %334 = vmatpush2.msra.mxu1 %v1285_v63  ;;  %264 = vmatprep.subr.mxu0 %v1289_v53  ;;  %1667 = vst [vmem:[#allocation88_spill] sm:$0xff] %v1309_v60  ;;  %1668 = vst [vmem:[#allocation89_spill] sm:$0xff] %v1313_v61  ;;  %v1315_v62 = vld [vmem:[#allocation8 + $0x128] sm:$0xff]  ;;  %v1319_v63 = vld [vmem:[#allocation7 + $0x120] sm:$0xff] }
  0x6e   :  { %335 = vmatprep.subr.mxu1 %v1291_v54  ;;  %265 = vmatpush2.msra.mxu0 %v1295_v55  ;;  %1669 = vst [vmem:[#allocation90_spill] sm:$0xff] %v1315_v62  ;;  %1670 = vst [vmem:[#allocation91_spill] sm:$0xff] %v1319_v63  ;;  %v1321_v53 = vld [vmem:[#allocation8 + $0x120] sm:$0xff]  ;;  %v1325_v54 = vld [vmem:[#allocation7 + $0x118] sm:$0xff] }
  0x6f   :  { %336 = vmatpush2.msra.mxu1 %v1297_v56  ;;  %266 = vmatprep.subr.mxu0 %v1301_v57  ;;  %1671 = vst [vmem:[#allocation92_spill] sm:$0xff] %v1321_v53  ;;  %1672 = vst [vmem:[#allocation93_spill] sm:$0xff] %v1325_v54  ;;  %v1327_v55 = vld [vmem:[#allocation8 + $0x118] sm:$0xff]  ;;  %v1331_v56 = vld [vmem:[#allocation7 + $0x110] sm:$0xff] }
  0x70   :  { %337 = vmatprep.subr.mxu1 %v1303_v58  ;;  %267 = vmatpush2.msra.mxu0 %v1307_v59  ;;  %v1333_v57 = vld [vmem:[#allocation8 + $0x110] sm:$0xff]  ;;  %v1337_v58 = vld [vmem:[#allocation7 + $0x108] sm:$0xff] }
  0x71   :  { %338 = vmatpush2.msra.mxu1 %v1309_v60  ;;  %268 = vmatprep.subr.mxu0 %v1313_v61  ;;  %v1339_v59 = vld [vmem:[#allocation8 + $0x108] sm:$0xff]  ;;  %v1343_v60 = vld [vmem:[#allocation7 + $0x100] sm:$0xff] }
  0x72   :  { %339 = vmatprep.subr.mxu1 %v1315_v62  ;;  %269 = vmatpush2.msra.mxu0 %v1319_v63  ;;  %v1345_v61 = vld [vmem:[#allocation2 + $0x8] sm:$0x3f]  ;;  %v1349_v62 = vld [vmem:[#allocation8 + $0x100] sm:$0xff]  ;;  %v1351_v63 = vld [vmem:[#allocation5 + $0x8] sm:$0x3f] }
  0x73   :  { %340 = vmatpush2.msra.mxu1 %v1321_v53  ;;  %270 = vmatprep.subr.mxu0 %v1325_v54  ;;  %v1355_v53 = vld [vmem:[#allocation2] sm:$0x3f]  ;;  %v1357_v54 = vld [vmem:[#allocation5] sm:$0x3f] }
  0x74   :  { %341 = vmatprep.subr.mxu1 %v1327_v55  ;;  %271 = vmatpush2.msra.mxu0 %v1331_v56 }
  0x75   :  { %342 = vmatpush2.msra.mxu1 %v1333_v57  ;;  %272 = vmatprep.subr.mxu0 %v1337_v58 }
  0x76   :  { %343 = vmatprep.subr.mxu1 %v1339_v59  ;;  %273 = vmatpush2.msra.mxu0 %v1343_v60 }
  0x77   :  { %274 = vmatprep.mubr.f32.mxu0 %v1345_v61  ;;  %344 = vmatpush2.msra.mxu1 %v1349_v62 }
  0x78   :  { %345 = vmatprep.mubr.f32.mxu1 %v1351_v63  ;;  %275 = vmatmul.mubr.f32.vlgmr.msra.gmra.mxu0 %v1355_v53 }
  0x79   :  { %346 = vmatmul.mubr.f32.vlgmr.msra.gmra.mxu1 %v1357_v54  ;;  %354 = vmatprep.subr.mxu0 %v969_v0  ;;  %v1673_v0 = vld [vmem:[#allocation26_spill] sm:$0xff] }
  0x7a   :  { %425 = vmatprep.subr.mxu1 %v971_v1  ;;  %355 = vmatpush1.msra.mxu0 %v973_v2  ;;  %v1674_v1 = vld [vmem:[#allocation27_spill] sm:$0xff]  ;;  %v1675_v2 = vld [vmem:[#allocation28_spill] sm:$0xff] }
  0x7b   :  { %426 = vmatpush1.msra.mxu1 %v977_v3  ;;  %356 = vmatprep.subr.mxu0 %v979_v4  ;;  %v1676_v3 = vld [vmem:[#allocation29_spill] sm:$0xff]  ;;  %v1677_v4 = vld [vmem:[#allocation30_spill] sm:$0xff] }
  0x7c   :  { %427 = vmatprep.subr.mxu1 %v981_v5  ;;  %357 = vmatpush1.msra.mxu0 %v985_v6  ;;  %v1678_v5 = vld [vmem:[#allocation31_spill] sm:$0xff]  ;;  %v1679_v6 = vld [vmem:[#allocation32_spill] sm:$0xff] }
  0x7d   :  { %428 = vmatpush1.msra.mxu1 %v987_v7  ;;  %358 = vmatprep.subr.mxu0 %v989_v8  ;;  %v1680_v7 = vld [vmem:[#allocation33_spill] sm:$0xff]  ;;  %v1681_v8 = vld [vmem:[#allocation34_spill] sm:$0xff] }
  0x7e   :  { %429 = vmatprep.subr.mxu1 %v993_v9  ;;  %359 = vmatpush1.msra.mxu0 %v995_v10  ;;  %v1682_v9 = vld [vmem:[#allocation35_spill] sm:$0xff]  ;;  %v1683_v10 = vld [vmem:[#allocation36_spill] sm:$0xff] }
  0x7f   :  { %430 = vmatpush1.msra.mxu1 %v997_v11  ;;  %360 = vmatprep.subr.mxu0 %v1001_v12  ;;  %v1684_v11 = vld [vmem:[#allocation37_spill] sm:$0xff]  ;;  %v1685_v12 = vld [vmem:[#allocation38_spill] sm:$0xff] }
  0x80   :  { %431 = vmatprep.subr.mxu1 %v1003_v13  ;;  %361 = vmatpush1.msra.mxu0 %v1007_v14  ;;  %v1686_v13 = vld [vmem:[#allocation39_spill] sm:$0xff]  ;;  %v1687_v14 = vld [vmem:[#allocation40_spill] sm:$0xff] }
  0x81   :  { %432 = vmatpush1.msra.mxu1 %v1009_v15  ;;  %362 = vmatprep.subr.mxu0 %v1013_v16  ;;  %v1688_v15 = vld [vmem:[#allocation41_spill] sm:$0xff]  ;;  %v1689_v16 = vld [vmem:[#allocation42_spill] sm:$0xff] }
  0x82   :  { %433 = vmatprep.subr.mxu1 %v1015_v17  ;;  %363 = vmatpush1.msra.mxu0 %v1019_v18  ;;  %v1690_v17 = vld [vmem:[#allocation43_spill] sm:$0xff]  ;;  %v1691_v18 = vld [vmem:[#allocation44_spill] sm:$0xff] }
  0x83   :  { %434 = vmatpush1.msra.mxu1 %v1021_v19  ;;  %364 = vmatprep.subr.mxu0 %v1025_v20  ;;  %v1692_v19 = vld [vmem:[#allocation45_spill] sm:$0xff]  ;;  %v1693_v20 = vld [vmem:[#allocation46_spill] sm:$0xff] }
  0x84   :  { %435 = vmatprep.subr.mxu1 %v1027_v21  ;;  %365 = vmatpush1.msra.mxu0 %v1031_v22  ;;  %v1694_v21 = vld [vmem:[#allocation47_spill] sm:$0xff]  ;;  %v1695_v22 = vld [vmem:[#allocation48_spill] sm:$0xff] }
  0x85   :  { %436 = vmatpush1.msra.mxu1 %v1033_v23  ;;  %366 = vmatprep.subr.mxu0 %v1037_v24  ;;  %v1696_v23 = vld [vmem:[#allocation49_spill] sm:$0xff]  ;;  %v1697_v24 = vld [vmem:[#allocation50_spill] sm:$0xff] }
  0x86   :  { %437 = vmatprep.subr.mxu1 %v1039_v25  ;;  %367 = vmatpush1.msra.mxu0 %v1043_v26  ;;  %v1698_v25 = vld [vmem:[#allocation51_spill] sm:$0xff]  ;;  %v1699_v26 = vld [vmem:[#allocation52_spill] sm:$0xff] }
  0x87   :  { %438 = vmatpush1.msra.mxu1 %v1045_v27  ;;  %368 = vmatprep.subr.mxu0 %v1049_v28  ;;  %v1700_v27 = vld [vmem:[#allocation53_spill] sm:$0xff]  ;;  %v1701_v28 = vld [vmem:[#allocation54_spill] sm:$0xff] }
  0x88   :  { %439 = vmatprep.subr.mxu1 %v1051_v29  ;;  %369 = vmatpush1.msra.mxu0 %v1055_v30  ;;  %v1702_v29 = vld [vmem:[#allocation55_spill] sm:$0xff]  ;;  %v1703_v30 = vld [vmem:[#allocation56_spill] sm:$0xff] }
  0x89   :  { %440 = vmatpush1.msra.mxu1 %v1057_v31  ;;  %370 = vmatprep.subr.mxu0 %v1061_v32  ;;  %v1704_v31 = vld [vmem:[#allocation57_spill] sm:$0xff]  ;;  %v1705_v32 = vld [vmem:[#allocation58_spill] sm:$0xff] }
  0x8a   :  { %441 = vmatprep.subr.mxu1 %v1063_v33  ;;  %371 = vmatpush1.msra.mxu0 %v1067_v34  ;;  %v1706_v33 = vld [vmem:[#allocation59_spill] sm:$0xff]  ;;  %v1707_v34 = vld [vmem:[#allocation60_spill] sm:$0xff] }
  0x8b   :  { %442 = vmatpush1.msra.mxu1 %v1069_v35  ;;  %372 = vmatprep.subr.mxu0 %v1073_v36  ;;  %v1708_v35 = vld [vmem:[#allocation61_spill] sm:$0xff]  ;;  %v1709_v36 = vld [vmem:[#allocation62_spill] sm:$0xff] }
  0x8c   :  { %443 = vmatprep.subr.mxu1 %v1075_v37  ;;  %373 = vmatpush1.msra.mxu0 %v1079_v38  ;;  %v1710_v37 = vld [vmem:[#allocation63_spill] sm:$0xff]  ;;  %v1711_v38 = vld [vmem:[#allocation64_spill] sm:$0xff] }
  0x8d   :  { %444 = vmatpush1.msra.mxu1 %v1081_v39  ;;  %374 = vmatprep.subr.mxu0 %v1085_v40  ;;  %v1712_v39 = vld [vmem:[#allocation65_spill] sm:$0xff]  ;;  %v1713_v40 = vld [vmem:[#allocation66_spill] sm:$0xff] }
  0x8e   :  { %445 = vmatprep.subr.mxu1 %v1087_v41  ;;  %375 = vmatpush1.msra.mxu0 %v1091_v42  ;;  %v1714_v41 = vld [vmem:[#allocation67_spill] sm:$0xff]  ;;  %v1715_v42 = vld [vmem:[#allocation68_spill] sm:$0xff] }
  0x8f   :  { %446 = vmatpush1.msra.mxu1 %v1093_v43  ;;  %376 = vmatprep.subr.mxu0 %v1097_v44  ;;  %v1716_v43 = vld [vmem:[#allocation69_spill] sm:$0xff]  ;;  %v1717_v44 = vld [vmem:[#allocation70_spill] sm:$0xff] }
  0x90   :  { %447 = vmatprep.subr.mxu1 %v1099_v45  ;;  %377 = vmatpush1.msra.mxu0 %v1103_v46  ;;  %v1718_v45 = vld [vmem:[#allocation71_spill] sm:$0xff]  ;;  %v1719_v46 = vld [vmem:[#allocation72_spill] sm:$0xff] }
  0x91   :  { %448 = vmatpush1.msra.mxu1 %v1105_v47  ;;  %378 = vmatprep.subr.mxu0 %v1109_v48  ;;  %v1720_v47 = vld [vmem:[#allocation73_spill] sm:$0xff]  ;;  %v1721_v48 = vld [vmem:[#allocation74_spill] sm:$0xff] }
  0x92   :  { %449 = vmatprep.subr.mxu1 %v1111_v49  ;;  %379 = vmatpush1.msra.mxu0 %v1115_v50  ;;  %v1722_v49 = vld [vmem:[#allocation75_spill] sm:$0xff]  ;;  %v1723_v50 = vld [vmem:[#allocation76_spill] sm:$0xff] }
  0x93   :  { %450 = vmatpush1.msra.mxu1 %v1117_v51  ;;  %380 = vmatprep.subr.mxu0 %v1121_v52  ;;  %v1724_v51 = vld [vmem:[#allocation77_spill] sm:$0xff]  ;;  %v1725_v52 = vld [vmem:[#allocation78_spill] sm:$0xff] }
  0x94   :  { %451 = vmatprep.subr.mxu1 %v1673_v0  ;;  %381 = vmatpush1.msra.mxu0 %v1674_v1  ;;  %v1726_v0 = vld [vmem:[#allocation79_spill] sm:$0xff]  ;;  %v1727_v1 = vld [vmem:[#allocation80_spill] sm:$0xff] }
  0x95   :  { %452 = vmatpush1.msra.mxu1 %v1675_v2  ;;  %382 = vmatprep.subr.mxu0 %v1676_v3  ;;  %v1728_v2 = vld [vmem:[#allocation81_spill] sm:$0xff]  ;;  %v1729_v3 = vld [vmem:[#allocation82_spill] sm:$0xff] }
  0x96   :  { %453 = vmatprep.subr.mxu1 %v1677_v4  ;;  %383 = vmatpush1.msra.mxu0 %v1678_v5  ;;  %v1730_v4 = vld [vmem:[#allocation83_spill] sm:$0xff]  ;;  %v1731_v5 = vld [vmem:[#allocation84_spill] sm:$0xff] }
  0x97   :  { %454 = vmatpush1.msra.mxu1 %v1679_v6  ;;  %384 = vmatprep.subr.mxu0 %v1680_v7  ;;  %v1732_v6 = vld [vmem:[#allocation85_spill] sm:$0xff]  ;;  %v1733_v7 = vld [vmem:[#allocation86_spill] sm:$0xff] }
  0x98   :  { %455 = vmatprep.subr.mxu1 %v1681_v8  ;;  %385 = vmatpush1.msra.mxu0 %v1682_v9  ;;  %v1734_v8 = vld [vmem:[#allocation87_spill] sm:$0xff]  ;;  %v1735_v9 = vld [vmem:[#allocation88_spill] sm:$0xff] }
  0x99   :  { %456 = vmatpush1.msra.mxu1 %v1683_v10  ;;  %386 = vmatprep.subr.mxu0 %v1684_v11  ;;  %v1736_v10 = vld [vmem:[#allocation89_spill] sm:$0xff]  ;;  %v1737_v11 = vld [vmem:[#allocation90_spill] sm:$0xff] }
  0x9a   :  { %457 = vmatprep.subr.mxu1 %v1685_v12  ;;  %387 = vmatpush2.msra.mxu0 %v1686_v13  ;;  %v1738_v12 = vld [vmem:[#allocation91_spill] sm:$0xff]  ;;  %v1739_v13 = vld [vmem:[#allocation92_spill] sm:$0xff] }
  0x9b   :  { %458 = vmatpush2.msra.mxu1 %v1687_v14  ;;  %388 = vmatprep.subr.mxu0 %v1688_v15  ;;  %v1740_v14 = vld [vmem:[#allocation93_spill] sm:$0xff] }
  0x9c   :  { %459 = vmatprep.subr.mxu1 %v1689_v16  ;;  %389 = vmatpush2.msra.mxu0 %v1690_v17 }
  0x9d   :  { %460 = vmatpush2.msra.mxu1 %v1691_v18  ;;  %390 = vmatprep.subr.mxu0 %v1692_v19 }
  0x9e   :  { %461 = vmatprep.subr.mxu1 %v1693_v20  ;;  %391 = vmatpush2.msra.mxu0 %v1694_v21 }
  0x9f   :  { %462 = vmatpush2.msra.mxu1 %v1695_v22  ;;  %392 = vmatprep.subr.mxu0 %v1696_v23 }
  0xa0   :  { %463 = vmatprep.subr.mxu1 %v1697_v24  ;;  %393 = vmatpush2.msra.mxu0 %v1698_v25 }
  0xa1   :  { %464 = vmatpush2.msra.mxu1 %v1699_v26  ;;  %394 = vmatprep.subr.mxu0 %v1700_v27 }
  0xa2   :  { %465 = vmatprep.subr.mxu1 %v1701_v28  ;;  %395 = vmatpush2.msra.mxu0 %v1702_v29 }
  0xa3   :  { %466 = vmatpush2.msra.mxu1 %v1703_v30  ;;  %396 = vmatprep.subr.mxu0 %v1704_v31 }
  0xa4   :  { %467 = vmatprep.subr.mxu1 %v1705_v32  ;;  %397 = vmatpush2.msra.mxu0 %v1706_v33 }
  0xa5   :  { %468 = vmatpush2.msra.mxu1 %v1707_v34  ;;  %398 = vmatprep.subr.mxu0 %v1708_v35 }
  0xa6   :  { %469 = vmatprep.subr.mxu1 %v1709_v36  ;;  %399 = vmatpush2.msra.mxu0 %v1710_v37 }
  0xa7   :  { %470 = vmatpush2.msra.mxu1 %v1711_v38  ;;  %400 = vmatprep.subr.mxu0 %v1712_v39 }
  0xa8   :  { %471 = vmatprep.subr.mxu1 %v1713_v40  ;;  %401 = vmatpush2.msra.mxu0 %v1714_v41 }
  0xa9   :  { %472 = vmatpush2.msra.mxu1 %v1715_v42  ;;  %402 = vmatprep.subr.mxu0 %v1716_v43 }
  0xaa   :  { %473 = vmatprep.subr.mxu1 %v1717_v44  ;;  %403 = vmatpush2.msra.mxu0 %v1718_v45 }
  0xab   :  { %474 = vmatpush2.msra.mxu1 %v1719_v46  ;;  %404 = vmatprep.subr.mxu0 %v1720_v47 }
  0xac   :  { %475 = vmatprep.subr.mxu1 %v1721_v48  ;;  %405 = vmatpush2.msra.mxu0 %v1722_v49 }
  0xad   :  { %476 = vmatpush2.msra.mxu1 %v1723_v50  ;;  %406 = vmatprep.subr.mxu0 %v1724_v51 }
  0xae   :  { %477 = vmatprep.subr.mxu1 %v1725_v52  ;;  %407 = vmatpush2.msra.mxu0 %v1726_v0 }
  0xaf   :  { %478 = vmatpush2.msra.mxu1 %v1727_v1  ;;  %408 = vmatprep.subr.mxu0 %v1728_v2 }
  0xb0   :  { %479 = vmatprep.subr.mxu1 %v1729_v3  ;;  %409 = vmatpush2.msra.mxu0 %v1730_v4 }
  0xb1   :  { %480 = vmatpush2.msra.mxu1 %v1731_v5  ;;  %410 = vmatprep.subr.mxu0 %v1732_v6 }
  0xb2   :  { %481 = vmatprep.subr.mxu1 %v1733_v7  ;;  %411 = vmatpush2.msra.mxu0 %v1734_v8 }
  0xb3   :  { %482 = vmatpush2.msra.mxu1 %v1735_v9  ;;  %412 = vmatprep.subr.mxu0 %v1736_v10 }
  0xb4   :  { %483 = vmatprep.subr.mxu1 %v1737_v11  ;;  %413 = vmatpush2.msra.mxu0 %v1738_v12 }
  0xb5   :  { %484 = vmatpush2.msra.mxu1 %v1739_v13  ;;  %414 = vmatprep.subr.mxu0 %v1740_v14 }
  0xb6   :  { %485 = vmatprep.subr.mxu1 %v1327_v55  ;;  %415 = vmatpush2.msra.mxu0 %v1331_v56  ;;  %v531_v55 = vmul.f32 %v1345_v61, %v1345_v61  ;;  %v533_v56 = vmul.f32 %v1351_v63, %v1351_v63 }
  0xb7   :  { %486 = vmatpush2.msra.mxu1 %v1333_v57  ;;  %416 = vmatprep.subr.mxu0 %v1337_v58  ;;  %v530_v57 = vmul.f32 %v1355_v53, %v1355_v53  ;;  %v532_v58 = vmul.f32 %v1357_v54, %v1357_v54 }
  0xb8   :  { %487 = vmatprep.subr.mxu1 %v1339_v59  ;;  %417 = vmatpush2.msra.mxu0 %v1343_v60  ;;  %v535_v59 = vadd.f32 %v533_v56, %v531_v55 }
  0xb9   :  { %418 = vmatprep.mubr.f32.mxu0 %v1351_v63  ;;  %488 = vmatpush2.msra.mxu1 %v1349_v62  ;;  %v534_v60 = vadd.f32 %v532_v58, %v530_v57 }
  0xba   :  { %489 = vmatprep.mubr.f32.mxu1 %v1345_v61  ;;  %419 = vmatmul.mubr.f32.vlgmr.msra.gmra.mxu0 %v1357_v54  ;;  %665 = vrsqrt.f32 %v535_v59  ;;  %vm545_vm1 = vcmp.eq.f32.partialorder %v535_v59, inf  ;;  %v548_v19 = vand.u32 2147483648, %v535_v59  ;;  %vm547_vm3 = vcmp.eq.f32.partialorder %v535_v59, 0.0 }
  0xbb   :  { %490 = vmatmul.mubr.f32.vlgmr.msra.gmra.mxu1 %v1355_v53  ;;  %667 = vrsqrt.f32 %v534_v60  ;;  %vm538_vm0 = vcmp.eq.f32.partialorder %v534_v60, inf  ;;  %v541_v18 = vand.u32 2147483648, %v534_v60  ;;  %vm540_vm2 = vcmp.eq.f32.partialorder %v534_v60, 0.0 }
  0xc7   :  { %v666_v62 = vpop.eup %665 }
  0xc8   :  { %v668_v15 = vpop.eup %667  ;;  %v544_v17 = vmul.f32 %v666_v62, %v535_v59 }
  0xc9   :  { %v537_v16 = vmul.f32 %v668_v15, %v534_v60 }
  0xca   :  { %v546_v21 = vsel %vm545_vm1, %v535_v59, %v544_v17 }
  0xcb   :  { %v539_v20 = vsel %vm538_vm0, %v534_v60, %v537_v16  ;;  %v549_v23 = vsel %vm547_vm3, %v548_v19, %v546_v21 }
  0xcc   :  { %v542_v22 = vsel %vm540_vm2, %v541_v18, %v539_v20  ;;  %vm551_vm5 = vcmp.gt.f32.partialorder %v549_v23, 0.0 }
  0xcd   :  { %vm550_vm4 = vcmp.gt.f32.partialorder %v542_v22, 0.0  ;;  %v553_v25 = vsel %vm551_vm5, %v549_v23, 1.0 }
  0xce   :  { %v552_v24 = vsel %vm550_vm4, %v542_v22, 1.0 }
  0xcf   :  { %669 = vrcp.f32 %v552_v24 }
  0xd0   :  { %671 = vrcp.f32 %v553_v25 }
  0xdc   :  { %v670_v26 = vpop.eup %669 }
  0xdd   :  { %v672_v27 = vpop.eup %671  ;;  %v556_v28 = vmul.f32 %v670_v26, %v1355_v53  ;;  %v562_v29 = vmul.f32 %v670_v26, %v1357_v54 }
  0xde   :  { %v557_v30 = vmul.f32 %v672_v27, %v1345_v61  ;;  %v563_v31 = vmul.f32 %v672_v27, %v1351_v63 }
  0xdf   :  { %v558_v32 = vsel %vm550_vm4, %v556_v28, 1.0  ;;  %v564_v33 = vsel %vm550_vm4, %v562_v29, 0.0 }
  0xe0   :  { %v559_v34 = vsel %vm551_vm5, %v557_v30, 1.0  ;;  %560 = vst [vmem:[#allocation16] sm:$0x3f] %v558_v32  ;;  %v565_v35 = vsel %vm551_vm5, %v563_v31, 0.0  ;;  %566 = vst [vmem:[#allocation17] sm:$0x3f] %v564_v33 }
  0xe1   :  { %561 = vst [vmem:[#allocation16 + $0x8] sm:$0x3f] %v559_v34  ;;  %567 = vst [vmem:[#allocation17 + $0x8] sm:$0x3f] %v565_v35 }
  0xe2   :  { %772 = shalt.err (!%p769_p10)
}
  0xe3   :  { %627 = dma.vmem_to_hbm [thread:$0]  %s625_s3, 256, %s1536_s9, [#allocation18]  }
  0xe4   :  { %s902_s11 = smov [#allocation10]  }
  0xe5   :  { %s574_s12 = sshll.u32 %s902_s11, 4  ;;  %s575_s12 = int_to_ptr.vmem [resolvable:$true] %s574_s12 }
  0xe6   :  { %s781_s13 = scalar_lea.vmem %s575_s12, 256  ;;  %p786_p12 = scmp.lt.s32.totalorder %s575_s12, %s575_s12 }
  0xe7   :  { %p782_p11 = scmp.ne.s32.totalorder %s575_s12, %s781_s13  ;;  %p787_p13 = scmp.lt.s32.totalorder %s781_s13, %s781_s13 }
  0xe9   :  { %p788_p0 = por %p787_p13, %p786_p12 }
  0xeb   :  { %p789_p1 = pnand %p788_p0, %p782_p11 }
 0x138   :  { %v276_v53 = vpop.f32.mrf.mxu0 }
 0x139   :  { %v347_v54 = vpop.f32.mrf.mxu1 }
 0x13a   :  { %v352_v61 = vsub.f32 %v276_v53, %v347_v54  ;;  %v278_v63 = vpop.f32.mrf.mxu0 }
 0x13b   :  { %v349_v36 = vpop.f32.mrf.mxu1 }
 0x13c   :  { %516 = vst [vmem:[#allocation10] sm:$0x3f] %v352_v61  ;;  %v353_v37 = vsub.f32 %v278_v63, %v349_v36 }
 0x13e   :  { %517 = vst [vmem:[#allocation10 + $0x8] sm:$0x3f] %v353_v37 }
 0x13f   :  { %792 = shalt.err (!%p789_p1)
}
 0x140   :  { %577 = dma.vmem_to_hbm [thread:$0]  %s575_s12, 256, %s1531_s4, [#allocation4]   ;;  %v496_v43 = vmul.f32 %v352_v61, %v352_v61  ;;  %v497_v46 = vmul.f32 %v353_v37, %v353_v37 }
 0x141   :  { %s903_s15 = smov [#allocation11]  }
 0x142   :  { %s584_s16 = sshll.u32 %s903_s15, 4  ;;  %s585_s16 = int_to_ptr.vmem [resolvable:$true] %s584_s16 }
 0x143   :  { %s801_s17 = scalar_lea.vmem %s585_s16, 256  ;;  %p806_p3 = scmp.lt.s32.totalorder %s585_s16, %s585_s16 }
 0x144   :  { %p802_p2 = scmp.ne.s32.totalorder %s585_s16, %s801_s17  ;;  %p807_p4 = scmp.lt.s32.totalorder %s801_s17, %s801_s17 }
 0x146   :  { %p808_p5 = por %p807_p4, %p806_p3 }
 0x148   :  { %p809_p6 = pnand %p808_p5, %p802_p2 }
 0x17a   :  { %v420_v38 = vpop.f32.mrf.mxu0 }
 0x17b   :  { %v491_v39 = vpop.f32.mrf.mxu1 }
 0x17c   :  { %v492_v40 = vadd.f32 %v491_v39, %v420_v38  ;;  %v422_v41 = vpop.f32.mrf.mxu0 }
 0x17d   :  { %v493_v42 = vpop.f32.mrf.mxu1 }
 0x17e   :  { %v498_v44 = vmul.f32 %v492_v40, %v492_v40  ;;  %518 = vst [vmem:[#allocation11] sm:$0x3f] %v492_v40  ;;  %v494_v45 = vadd.f32 %v493_v42, %v422_v41 }
 0x180   :  { %v500_v47 = vadd.f32 %v498_v44, %v496_v43  ;;  %v499_v48 = vmul.f32 %v494_v45, %v494_v45  ;;  %519 = vst [vmem:[#allocation11 + $0x8] sm:$0x3f] %v494_v45 }
 0x181   :  { %812 = shalt.err (!%p809_p6)
}
 0x182   :  { %587 = dma.vmem_to_hbm [thread:$0]  %s585_s16, 256, %s1532_s5, [#allocation12]   ;;  %673 = vrsqrt.f32 %v500_v47  ;;  %v501_v49 = vadd.f32 %v499_v48, %v497_v46  ;;  %vm504_vm6 = vcmp.eq.f32.partialorder %v500_v47, inf  ;;  %v507_v0 = vand.u32 2147483648, %v500_v47 }
 0x183   :  { %s904_s19 = smov [#allocation13]   ;;  %vm506_vm7 = vcmp.eq.f32.partialorder %v500_v47, 0.0 }
 0x184   :  { %675 = vrsqrt.f32 %v501_v49  ;;  %s594_s20 = sshll.u32 %s904_s19, 4  ;;  %vm511_vm8 = vcmp.eq.f32.partialorder %v501_v49, inf  ;;  %v514_v4 = vand.u32 2147483648, %v501_v49  ;;  %vm513_vm9 = vcmp.eq.f32.partialorder %v501_v49, 0.0  ;;  %s595_s20 = int_to_ptr.vmem [resolvable:$true] %s594_s20 }
 0x185   :  { %s821_s5 = scalar_lea.vmem %s595_s20, 256  ;;  %p826_p8 = scmp.lt.s32.totalorder %s595_s20, %s595_s20 }
 0x186   :  { %p822_p7 = scmp.ne.s32.totalorder %s595_s20, %s821_s5  ;;  %p827_p9 = scmp.lt.s32.totalorder %s821_s5, %s821_s5 }
 0x188   :  { %p828_p10 = por %p827_p9, %p826_p8 }
 0x18a   :  { %p829_p11 = pnand %p828_p10, %p822_p7 }
 0x18f   :  { %v674_v50 = vpop.eup %673 }
 0x190   :  { %v503_v51 = vmul.f32 %v674_v50, %v500_v47 }
 0x191   :  { %v676_v52 = vpop.eup %675 }
 0x192   :  { %v505_v1 = vsel %vm504_vm6, %v500_v47, %v503_v51  ;;  %v510_v2 = vmul.f32 %v676_v52, %v501_v49 }
 0x193   :  { %v508_v3 = vsel %vm506_vm7, %v507_v0, %v505_v1 }
 0x194   :  { %v512_v5 = vsel %vm511_vm8, %v501_v49, %v510_v2  ;;  %v522_v6 = vadd.f32 1.0, %v508_v3  ;;  %520 = vst [vmem:[#allocation13] sm:$0x3f] %v508_v3 }
 0x195   :  { %v515_v7 = vsel %vm513_vm9, %v514_v4, %v512_v5 }
 0x196   :  { %v523_v8 = vadd.f32 1.0, %v515_v7  ;;  %677 = vlog2.f32 %v522_v6  ;;  %521 = vst [vmem:[#allocation13 + $0x8] sm:$0x3f] %v515_v7 }
 0x197   :  { %832 = shalt.err (!%p829_p11)
}
 0x198   :  { %597 = dma.vmem_to_hbm [thread:$0]  %s595_s20, 256, %s1533_s6, [#allocation12]   ;;  %679 = vlog2.f32 %v523_v8 }
 0x199   :  { %s905_s22 = smov [#allocation14]   ;;  %s906_s24 = smov [#allocation16]  }
 0x19a   :  { %s604_s23 = sshll.u32 %s905_s22, 4  ;;  %s614_s25 = sshll.u32 %s906_s24, 4  ;;  %s605_s23 = int_to_ptr.vmem [resolvable:$true] %s604_s23  ;;  %s615_s25 = int_to_ptr.vmem [resolvable:$true] %s614_s25 }
 0x19b   :  { %s841_s26 = scalar_lea.vmem %s605_s23, 256  ;;  %p846_p13 = scmp.lt.s32.totalorder %s605_s23, %s605_s23 }
 0x19c   :  { %p842_p12 = scmp.ne.s32.totalorder %s605_s23, %s841_s26  ;;  %p847_p0 = scmp.lt.s32.totalorder %s841_s26, %s841_s26 }
 0x19e   :  { %p848_p1 = por %p847_p0, %p846_p13 }
 0x1a0   :  { %p849_p2 = pnand %p848_p1, %p842_p12 }
 0x1a3   :  { %v678_v9 = vpop.eup %677 }
 0x1a4   :  { %v525_v10 = vmul.f32 0.6931472, %v678_v9 }
 0x1a5   :  { %v680_v11 = vpop.eup %679 }
 0x1a6   :  { %v527_v12 = vmul.f32 0.6931472, %v680_v11  ;;  %528 = vst [vmem:[#allocation14] sm:$0x3f] %v525_v10 }
 0x1a8   :  { %529 = vst [vmem:[#allocation14 + $0x8] sm:$0x3f] %v527_v12 }
 0x1a9   :  { %852 = shalt.err (!%p849_p2)
}
 0x1aa   :  { %607 = dma.vmem_to_hbm [thread:$0]  %s605_s23, 256, %s1534_s7, [#allocation15]  }
 0x1ab   :  { %s861_s27 = scalar_lea.vmem %s615_s25, 256  ;;  %p866_p4 = scmp.lt.s32.totalorder %s615_s25, %s615_s25 }
 0x1ac   :  { %p862_p3 = scmp.ne.s32.totalorder %s615_s25, %s861_s27  ;;  %p867_p5 = scmp.lt.s32.totalorder %s861_s27, %s861_s27 }
 0x1ae   :  { %p868_p6 = por %p867_p5, %p866_p4 }
 0x1b0   :  { %p869_p7 = pnand %p868_p6, %p862_p3 }
 0x1b2   :  { %872 = shalt.err (!%p869_p7)
}
 0x1b3   :  { %617 = dma.vmem_to_hbm [thread:$0]  %s615_s25, 256, %s1535_s8, [#allocation15]  }
 0x1b4   :  { %887 = dma.done.wait [#allocation4], 256  }
 0x1b5   :  { %888 = vsyncadd [#allocation4], 4294967040 }
 0x1b6   :  { %889 = dma.done.wait [#allocation12], 512  }
 0x1b7   :  { %890 = vsyncadd [#allocation12], 4294966784 }
 0x1b8   :  { %891 = dma.done.wait [#allocation15], 512  }
 0x1b9   :  { %892 = vsyncadd [#allocation15], 4294966784 }
 0x1ba   :  { %893 = dma.done.wait [#allocation18], 256  }
 0x1bb   :  { %894 = vsyncadd [#allocation18], 4294967040 }
 0x1bc   :  { %646 = vsyncpa [#allocation3], 1 }
 0x1bd   :  { %647 = vsyncpa [#allocation6], 1 }
 0x1be   :  { %648 = vsyncpa [#allocation9], 1 }
 0x1bf   :  { %649 = vsyncpa [#allocation4], 1 }
 0x1c0   :  { %650 = vsyncpa [#allocation12], 1 }
 0x1c1   :  { %651 = vsyncpa [#allocation15], 1 }
 0x1c2   :  { %652 = vsyncpa [#allocation18], 1 }

</bundles_post_ra>
